<compile_context>
chip_gen: v5e
topology: v5e:2x2
jax: 0.10.0
libtpu: 0.0.40
codegen_flags: <defaults>
</compile_context>

<pallas_src>
import functools

import jax
import jax.numpy as jnp
from jax.experimental import pallas as pl
from jax.experimental.pallas import tpu as pltpu


# ----------------------------------------------------------------------------- kernel
def _additive_attention_kernel(enc_ref, dec_ref, w1t_ref, w2t_ref, v_ref,
                               ctx_ref, probs_ref,
                               dec_proj_ref, l_ref, acc_ref,
                               *, num_t: int, tt: int, ew_dtype):
    t = pl.program_id(1)

    # ---- per-batch-tile init (first T step only) ----------------------------
    @pl.when(t == 0)
    def _init():
        l_ref[...] = jnp.zeros_like(l_ref)
        acc_ref[...] = jnp.zeros_like(acc_ref)
        # decoder projection is T-invariant: compute once per batch tile
        dec_proj_ref[...] = jnp.dot(dec_ref[...], w2t_ref[...],
                                    preferred_element_type=jnp.float32)

    enc = enc_ref[...]                                   # [TB, TT, E] (matmul dtype)
    tb, tcur, e_dim = enc.shape

    # ---- encoder projection: flatten leading dims to fill the MXU -----------
    if tcur % 8 == 0:
        enc_proj = jnp.dot(enc.reshape(tb * tcur, e_dim), w1t_ref[...],
                           preferred_element_type=jnp.float32)
        enc_proj = enc_proj.reshape(tb, tcur, -1)        # [TB, TT, I] f32
    else:  # layout-unfriendly reshape -> keep batched form
        enc_proj = jnp.einsum('bte,ei->bti', enc, w1t_ref[...],
                              preferred_element_type=jnp.float32)

    # ---- tanh stage: bf16 on v6e/v7x (2x VPU/EUP packing), f32 on v5e --------
    h = jnp.tanh((enc_proj + dec_proj_ref[...][:, None, :]).astype(ew_dtype))

    # ---- score: VPU multiply + lane reduce with f32 accumulation -------------
    v_row = v_ref[...]                                    # [1, I] f32 (resident)
    s_t = jnp.sum(h * v_row[None, :, :].astype(ew_dtype),
                  axis=-1, dtype=jnp.float32)             # [TB, TT] lane-dense

    # ---- static-bound softmax over the T axis --------------------------------
    # |score| <= ||v||_1 because |tanh| <= 1, so exp(s - m) is in [exp(-2m), 1]:
    # no overflow, no running max / rescale needed (wrapper asserts 2m < ~80).
    m = jnp.sum(jnp.abs(v_row))                           # scalar, one vreg reduce
    e_t = jnp.exp(s_t - m)                                # [TB, TT] f32
    l_ref[...] += jnp.sum(e_t, axis=-1, keepdims=True)

    # ---- context accumulation: product in ew_dtype, accumulate f32 -----------
    # TODO(synk): on v5e a fori_loop-chunked weighted sum would bound the f32
    # temporary further; here the budget-driven tile sizing already accounts for it.
    if ew_dtype == jnp.float32:
        prod = e_t[:, :, None] * enc.astype(jnp.float32)
    else:
        prod = e_t.astype(enc.dtype)[:, :, None] * enc
    acc_ref[...] += jnp.sum(prod, axis=1, dtype=jnp.float32)

    # stash raw scores in the (T-resident, lane-dense) probs output block
    if num_t == 1:
        probs_ref[...] = s_t
    else:
        probs_ref[:, pl.ds(pl.multiple_of(t * tt, tt), tt)] = s_t

    # ---- finalize on the last T step -----------------------------------------
    @pl.when(t == num_t - 1)
    def _finalize():
        inv_l = pl.reciprocal(l_ref[...], approx=False)   # once per tile: exact is free
        ctx_ref[...] = (acc_ref[...] * inv_l).astype(ctx_ref.dtype)
        probs_ref[...] = (jnp.exp(probs_ref[...] - m) * inv_l).astype(probs_ref.dtype)


# ----------------------------------------------------------------------------- tiling
def _round_up(x, m):
    return ((x + m - 1) // m) * m


def _tpu_flavor():
    """(is_v5_or_older, is_v7) from the local device kind; robust to non-TPU."""
    try:
        kind = jax.devices()[0].device_kind.lower()
    except Exception:  # pragma: no cover
        kind = ""
    is_v7 = "v7" in kind
    is_v5 = any(tag in kind for tag in ("v5", "v4", "v3"))
    return is_v5, is_v7


def _vmem_capacity_bytes(is_v7):
    try:
        return int(pltpu.get_tpu_info().vmem_capacity_bytes)
    except Exception:  # pragma: no cover
        return (64 if is_v7 else 128) * 1024 * 1024


def _vmem_estimate(tb, tt, T, E, I, D, esize, ewsize):
    """Rough per-step VMEM working set for the kernel body + pipeline buffers."""
    enc_tile = tb * tt * E * esize * 2              # encoder input, double-buffered
    proj_f32 = tb * tt * I * 4                      # MXU projection output (f32)
    h_tmp = tb * tt * I * ewsize                    # tanh intermediate
    score_tmp = tb * tt * 4 * 2                     # s_t / e_t
    wsum_tmp = tb * tt * E * max(ewsize, esize)     # weighted-sum temporary
    probs_out = tb * T * 4 * 2                      # T-resident output block
    ctx_out = tb * E * 4 * 2
    dec_in = tb * D * esize * 2
    weights = (E * I + D * I + I) * esize * 2 + I * 4 * 2
    scratch = tb * I * 4 + tb * 4 + tb * E * 4
    return (enc_tile + proj_f32 + h_tmp + score_tmp + wsum_tmp
            + probs_out + ctx_out + dec_in + weights + scratch)


def _choose_tiles(B, T, E, I, D, esize, ewsize, budget, is_v7,
                  batch_tile=None, time_tile=None):
    # --- time-tile candidates: always tile when T >= 256 and 128-aligned ------
    if time_tile is not None:
        tt_cands = [time_tile]
    elif T % 128 == 0 and T >= 256:
        tt_cands = [t for t in (512, 256, 128) if T % t == 0 and t < T] or [T]
    else:
        tt_cands = [T]

    # --- batch-tile candidates -------------------------------------------------
    if batch_tile is not None:
        tb_cands = [batch_tile]
    else:
        tb_cands = []
        tb_pref = B if B <= 128 else 128
        if is_v7 and 8 < B <= 128:
            half = _round_up(-(-B // 2), 8)          # nb >= 2 -> both TensorCores busy
            if half < B:
                tb_cands.append(half)
        if tb_pref not in tb_cands:
            tb_cands.append(tb_pref)
        cur = tb_pref
        while cur > 8:                               # halving fallbacks (mult. of 8)
            cur = _round_up(cur // 2, 8)
            if cur not in tb_cands:
                tb_cands.append(cur)

    for tb in tb_cands:
        for tt in tt_cands:
            if _vmem_estimate(tb, tt, T, E, I, D, esize, ewsize) <= budget:
                return tb, tt
    return tb_cands[-1], tt_cands[-1]                # smallest combination, best effort


# ----------------------------------------------------------------------------- wrapper
def additive_attention(encoder_states, decoder_state, w1, w2, v,
                       *, matmul_dtype=jnp.bfloat16,
                       batch_tile=None, time_tile=None):
    """encoder_states: [B, T, E], decoder_state: [B, D]
       w1: [I, E], w2: [I, D], v: [1, I]  (nn.Linear weight layout, bias=False)
       returns (final_context_vec [B, E], attention_probs [B, T, 1])"""
    B, T, E = encoder_states.shape
    _, D = decoder_state.shape
    I = w1.shape[0]

    is_v5, is_v7 = _tpu_flavor()
    # elementwise dtype for tanh / context weighting: bf16 only where the VPU/EUP
    # support it natively (v6e/v7x); keep f32 on v5e and when matmuls are f32.
    ew_dtype = jnp.float32 if (is_v5 or matmul_dtype == jnp.float32) else jnp.bfloat16

    capacity = _vmem_capacity_bytes(is_v7)
    budget = int(capacity * 0.70)                    # ~45 MiB on v7x, ~90 MiB on v6e/v5e

    esize = jnp.dtype(matmul_dtype).itemsize
    ewsize = jnp.dtype(ew_dtype).itemsize
    tb, tt = _choose_tiles(B, T, E, I, D, esize, ewsize, budget, is_v7,
                           batch_tile=batch_tile, time_tile=time_tile)

    assert tb == B or tb % 8 == 0, "batch tile must be full B or a multiple of 8"
    assert tt == T or (tt % 128 == 0 and T % tt == 0), \
        "time tile must be full T or a 128-multiple dividing T"

    nb = pl.cdiv(B, tb)
    nt = pl.cdiv(T, tt)

    est = _vmem_estimate(tb, tt, T, E, I, D, esize, ewsize)
    vmem_limit = min(int(capacity * 0.75), 100 * 1024 * 1024)
    vmem_limit = min(max(vmem_limit, est + (8 << 20), 32 << 20), int(capacity * 0.90))

    enc_c = encoder_states.astype(matmul_dtype)
    dec_c = decoder_state.astype(matmul_dtype)
    w1t = jnp.asarray(w1).astype(matmul_dtype).T          # [E, I]
    w2t = jnp.asarray(w2).astype(matmul_dtype).T          # [D, I]
    v_row = jnp.asarray(v, jnp.float32).reshape(1, I)     # [1, I], stays f32

    # static softmax bound safety: exp exponents live in [-2*||v||_1, 0]; make sure
    # the lower end stays above the f32 underflow knee (only checkable when concrete).
    try:
        m_val = float(jnp.sum(jnp.abs(v_row)))
        assert 2.0 * m_val < 80.0, \
            "||v||_1 too large for the static softmax bound; use a running max instead"
    except Exception:
        pass  # traced under jit: skip the concrete check

    kernel = functools.partial(_additive_attention_kernel,
                               num_t=nt, tt=tt, ew_dtype=ew_dtype)

    ctx, probs_bt = pl.pallas_call(
        kernel,
        out_shape=(
            jax.ShapeDtypeStruct((B, E), jnp.float32),
            jax.ShapeDtypeStruct((B, T), jnp.float32),    # lane-dense probs
        ),
        grid_spec=pltpu.PrefetchScalarGridSpec(
            num_scalar_prefetch=0,
            grid=(nb, nt),
            in_specs=[
                pl.BlockSpec((tb, tt, E), lambda b, t: (b, t, 0)),   # encoder tile
                pl.BlockSpec((tb, D), lambda b, t: (b, 0)),          # decoder state
                pl.BlockSpec((E, I), lambda b, t: (0, 0)),           # W1^T (resident)
                pl.BlockSpec((D, I), lambda b, t: (0, 0)),           # W2^T (resident)
                pl.BlockSpec((1, I), lambda b, t: (0, 0)),           # v row (resident)
            ],
            out_specs=(
                pl.BlockSpec((tb, E), lambda b, t: (b, 0)),          # ctx (T-resident)
                pl.BlockSpec((tb, T), lambda b, t: (b, 0)),          # probs (T-resident)
            ),
            scratch_shapes=[
                pltpu.VMEM((tb, I), jnp.float32),   # decoder projection
                pltpu.VMEM((tb, 1), jnp.float32),   # running denom
                pltpu.VMEM((tb, E), jnp.float32),   # ctx accumulator
            ],
        ),
        compiler_params=pltpu.CompilerParams(
            dimension_semantics=("parallel", "arbitrary"),
            vmem_limit_bytes=int(vmem_limit),
        ),
    )(enc_c, dec_c, w1t, w2t, v_row)

    return ctx, probs_bt[:, :, None]


# ----------------------------------------------------------------------------- reference
def _reference(encoder_states, decoder_state, w1, w2, v):
    # pure-JAX f32 re-implementation of the PyTorch forward
    enc_proj = jnp.einsum('bte,ie->bti', encoder_states, w1)
    dec_proj = jnp.einsum('bd,id->bi', decoder_state, w2)
    scores = jnp.einsum('bti,oi->bto', jnp.tanh(enc_proj + dec_proj[:, None, :]), v)[..., 0]
    probs = jax.nn.softmax(scores, axis=1)[..., None]
    ctx = jnp.sum(probs * encoder_states, axis=1)
    return ctx, probs


if __name__ == "__main__":
    # Small shapes consistent with the module.
    B, T = 8, 8
    ENC_DIM, DEC_DIM = 32, 16
    INTERNAL_DIM = (ENC_DIM + DEC_DIM) // 2  # 24, module default

    key = jax.random.PRNGKey(0)
    k_enc, k_dec, k_w1, k_w2, k_v = jax.random.split(key, 5)

    encoder_states = jax.random.normal(k_enc, (B, T, ENC_DIM), dtype=jnp.float32)
    decoder_state = jax.random.normal(k_dec, (B, DEC_DIM), dtype=jnp.float32)

    # nn.Linear weight shapes (bias=False), deterministic init.
    w1 = jax.random.uniform(k_w1, (INTERNAL_DIM, ENC_DIM), jnp.float32,
                            -1.0 / ENC_DIM ** 0.5, 1.0 / ENC_DIM ** 0.5)
    w2 = jax.random.uniform(k_w2, (INTERNAL_DIM, DEC_DIM), jnp.float32,
                            -1.0 / DEC_DIM ** 0.5, 1.0 / DEC_DIM ** 0.5)
    v = jax.random.uniform(k_v, (1, INTERNAL_DIM), jnp.float32,
                           -1.0 / INTERNAL_DIM ** 0.5, 1.0 / INTERNAL_DIM ** 0.5)

    ctx, probs = additive_attention(encoder_states, decoder_state, w1, w2, v)
    jax.block_until_ready((ctx, probs))

    ctx_ref, probs_ref = _reference(encoder_states, decoder_state, w1, w2, v)

    assert ctx.shape == (B, ENC_DIM) and probs.shape == (B, T, 1)
    # bf16 MXU operands + bf16 tanh/weighting stage -> moderate tolerances vs f32 ref
    assert jnp.allclose(ctx, ctx_ref, atol=5e-2, rtol=5e-2)
    assert jnp.allclose(probs, probs_ref, atol=3e-2, rtol=5e-2)
    # softmax rows must sum to 1 (exact reciprocal in finalize -> tight tolerance)
    assert jnp.allclose(jnp.sum(probs[..., 0], axis=1), jnp.ones((B,)), atol=2e-3)

    print("KERNEL_OK")
</pallas_src>

<mosaic_0001>
module attributes {stable_mosaic.version = 11 : i64} {
  func.func @_additive_attention_kernel(%arg0: i32, %arg1: i32, %arg2: memref<8x8x32xbf16, #tpu.memory_space<vmem>>, %arg3: memref<8x16xbf16, #tpu.memory_space<vmem>>, %arg4: memref<32x24xbf16, #tpu.memory_space<vmem>>, %arg5: memref<16x24xbf16, #tpu.memory_space<vmem>>, %arg6: memref<1x24xf32, #tpu.memory_space<vmem>>, %arg7: memref<8x32xf32, #tpu.memory_space<vmem>>, %arg8: memref<8x8xf32, #tpu.memory_space<vmem>>, %arg9: memref<8x24xf32, #tpu.memory_space<vmem>>, %arg10: memref<8x1xf32, #tpu.memory_space<vmem>>, %arg11: memref<8x32xf32, #tpu.memory_space<vmem>>) attributes {dimension_semantics = [#tpu.dimension_semantics<parallel>, #tpu.dimension_semantics<arbitrary>], iteration_bounds = array<i64: 1, 1>, scalar_prefetch = 0 : i64, scratch_operands = 3 : i64, tpu.core_type = #tpu.core_type<tc>, window_params = [{transform_indices = @transform_0, window_bounds = array<i64: 8, 8, 32>}, {transform_indices = @transform_1, window_bounds = array<i64: 8, 16>}, {pipeline_mode = #tpu.pipeline_mode<synchronous>, transform_indices = @transform_2, window_bounds = array<i64: 32, 24>}, {pipeline_mode = #tpu.pipeline_mode<synchronous>, transform_indices = @transform_3, window_bounds = array<i64: 16, 24>}, {pipeline_mode = #tpu.pipeline_mode<synchronous>, transform_indices = @transform_4, window_bounds = array<i64: 1, 24>}, {transform_indices = @transform_5, window_bounds = array<i64: 8, 32>}, {transform_indices = @transform_6, window_bounds = array<i64: 8, 8>}]} {
    %c0_i32 = arith.constant 0 : i32
    %0 = arith.cmpi eq, %arg1, %c0_i32 : i32
    %1 = arith.extui %0 : i1 to i32
    %c0_i32_0 = arith.constant 0 : i32
    %2 = arith.cmpi ne, %1, %c0_i32_0 : i32
    scf.if %2 {
      %cst_25 = arith.constant 0.000000e+00 : f32
      %47 = vector.broadcast %cst_25 : f32 to vector<8x1xf32>
      %c0_26 = arith.constant 0 : index
      %c0_27 = arith.constant 0 : index
      %48 = vector.load %arg10[%c0_26, %c0_27] : memref<8x1xf32, #tpu.memory_space<vmem>>, vector<8x1xf32>
      tpu.vector_store %arg10[%c0_26, %c0_27], %47 {strides = array<i32>} : memref<8x1xf32, #tpu.memory_space<vmem>>, vector<8x1xf32>,
      %cst_28 = arith.constant 0.000000e+00 : f32
      %49 = vector.broadcast %cst_28 : f32 to vector<8x32xf32>
      %c0_29 = arith.constant 0 : index
      %c0_30 = arith.constant 0 : index
      %50 = vector.load %arg11[%c0_29, %c0_30] : memref<8x32xf32, #tpu.memory_space<vmem>>, vector<8x32xf32>
      tpu.vector_store %arg11[%c0_29, %c0_30], %49 {strides = array<i32>} : memref<8x32xf32, #tpu.memory_space<vmem>>, vector<8x32xf32>,
      %c0_31 = arith.constant 0 : index
      %c0_32 = arith.constant 0 : index
      %51 = vector.load %arg3[%c0_31, %c0_32] : memref<8x16xbf16, #tpu.memory_space<vmem>>, vector<8x16xbf16>
      %c0_33 = arith.constant 0 : index
      %c0_34 = arith.constant 0 : index
      %52 = vector.load %arg5[%c0_33, %c0_34] : memref<16x24xbf16, #tpu.memory_space<vmem>>, vector<16x24xbf16>
      %cst_35 = arith.constant dense<0.000000e+00> : vector<8x24xf32>
      %53 = tpu.matmul %51, %52, %cst_35 {dimension_numbers = #tpu.dot_dimension_numbers<[1], [0], [0], [1], [0, 0, 1, 1], [], []>} : vector<8x16xbf16>, vector<16x24xbf16>, vector<8x24xf32> -> vector<8x24xf32>
      %c0_36 = arith.constant 0 : index
      %c0_37 = arith.constant 0 : index
      %54 = vector.load %arg9[%c0_36, %c0_37] : memref<8x24xf32, #tpu.memory_space<vmem>>, vector<8x24xf32>
      tpu.vector_store %arg9[%c0_36, %c0_37], %53 {strides = array<i32>} : memref<8x24xf32, #tpu.memory_space<vmem>>, vector<8x24xf32>,
    } else {
    }
    %c0 = arith.constant 0 : index
    %c0_1 = arith.constant 0 : index
    %c0_2 = arith.constant 0 : index
    %3 = vector.load %arg2[%c0, %c0_1, %c0_2] : memref<8x8x32xbf16, #tpu.memory_space<vmem>>, vector<8x8x32xbf16>
    %4 = vector.shape_cast %3 : vector<8x8x32xbf16> to vector<64x32xbf16>
    %c0_3 = arith.constant 0 : index
    %c0_4 = arith.constant 0 : index
    %5 = vector.load %arg4[%c0_3, %c0_4] : memref<32x24xbf16, #tpu.memory_space<vmem>>, vector<32x24xbf16>
    %cst = arith.constant dense<0.000000e+00> : vector<64x24xf32>
    %6 = tpu.matmul %4, %5, %cst {dimension_numbers = #tpu.dot_dimension_numbers<[1], [0], [0], [1], [0, 0, 1, 1], [], []>} : vector<64x32xbf16>, vector<32x24xbf16>, vector<64x24xf32> -> vector<64x24xf32>
    %7 = vector.shape_cast %6 : vector<64x24xf32> to vector<8x8x24xf32>
    %c0_5 = arith.constant 0 : index
    %c0_6 = arith.constant 0 : index
    %8 = vector.load %arg9[%c0_5, %c0_6] : memref<8x24xf32, #tpu.memory_space<vmem>>, vector<8x24xf32>
    %9 = vector.shape_cast %8 : vector<8x24xf32> to vector<8x1x24xf32>
    %10 = vector.broadcast %9 : vector<8x1x24xf32> to vector<8x8x24xf32>
    %11 = arith.addf %7, %10 : vector<8x8x24xf32>
    %12 = arith.truncf %11 : vector<8x8x24xf32> to vector<8x8x24xbf16>
    %13 = math.tanh %12 : vector<8x8x24xbf16>
    %c0_7 = arith.constant 0 : index
    %c0_8 = arith.constant 0 : index
    %14 = vector.load %arg6[%c0_7, %c0_8] : memref<1x24xf32, #tpu.memory_space<vmem>>, vector<1x24xf32>
    %15 = vector.shape_cast %14 : vector<1x24xf32> to vector<1x1x24xf32>
    %16 = arith.truncf %15 : vector<1x1x24xf32> to vector<1x1x24xbf16>
    %17 = vector.broadcast %16 : vector<1x1x24xbf16> to vector<8x8x24xbf16>
    %18 = arith.mulf %13, %17 : vector<8x8x24xbf16>
    %19 = arith.extf %18 : vector<8x8x24xbf16> to vector<8x8x24xf32>
    %cst_9 = arith.constant dense<0.000000e+00> : vector<8x8xf32>
    %20 = vector.multi_reduction <add>, %19, %cst_9 [2] : vector<8x8x24xf32> to vector<8x8xf32>
    %21 = math.absf %14 : vector<1x24xf32>
    %22 = vector.shape_cast %21 : vector<1x24xf32> to vector<1x1x24xf32>
    %cst_10 = arith.constant dense<0.000000e+00> : vector<1xf32>
    %23 = vector.multi_reduction <add>, %22, %cst_10 [1, 2] : vector<1x1x24xf32> to vector<1xf32>
    %24 = vector.shape_cast %23 : vector<1xf32> to vector<1x1x1xf32>
    %25 = vector.extract %24[0, 0, 0] : f32 from vector<1x1x1xf32>
    %26 = vector.broadcast %25 : f32 to vector<8x8xf32>
    %27 = arith.subf %20, %26 : vector<8x8xf32>
    %28 = math.exp %27 : vector<8x8xf32>
    %c0_11 = arith.constant 0 : index
    %c0_12 = arith.constant 0 : index
    %29 = vector.load %arg10[%c0_11, %c0_12] : memref<8x1xf32, #tpu.memory_space<vmem>>, vector<8x1xf32>
    %cst_13 = arith.constant dense<0.000000e+00> : vector<8xf32>
    %30 = vector.multi_reduction <add>, %28, %cst_13 [1] : vector<8x8xf32> to vector<8xf32>
    %31 = vector.shape_cast %30 : vector<8xf32> to vector<8x1xf32>
    %32 = arith.addf %29, %31 : vector<8x1xf32>
    %c0_14 = arith.constant 0 : index
    %c0_15 = arith.constant 0 : index
    %33 = vector.load %arg10[%c0_14, %c0_15] : memref<8x1xf32, #tpu.memory_space<vmem>>, vector<8x1xf32>
    tpu.vector_store %arg10[%c0_14, %c0_15], %32 {strides = array<i32>} : memref<8x1xf32, #tpu.memory_space<vmem>>, vector<8x1xf32>,
    %34 = arith.truncf %28 : vector<8x8xf32> to vector<8x8xbf16>
    %35 = vector.shape_cast %34 : vector<8x8xbf16> to vector<8x8x1xbf16>
    %36 = vector.broadcast %35 : vector<8x8x1xbf16> to vector<8x8x32xbf16>
    %37 = arith.mulf %36, %3 : vector<8x8x32xbf16>
    %c0_16 = arith.constant 0 : index
    %c0_17 = arith.constant 0 : index
    %38 = vector.load %arg11[%c0_16, %c0_17] : memref<8x32xf32, #tpu.memory_space<vmem>>, vector<8x32xf32>
    %39 = arith.extf %37 : vector<8x8x32xbf16> to vector<8x8x32xf32>
    %cst_18 = arith.constant dense<0.000000e+00> : vector<8x32xf32>
    %40 = vector.multi_reduction <add>, %39, %cst_18 [1] : vector<8x8x32xf32> to vector<8x32xf32>
    %41 = arith.addf %38, %40 : vector<8x32xf32>
    %c0_19 = arith.constant 0 : index
    %c0_20 = arith.constant 0 : index
    %42 = vector.load %arg11[%c0_19, %c0_20] : memref<8x32xf32, #tpu.memory_space<vmem>>, vector<8x32xf32>
    tpu.vector_store %arg11[%c0_19, %c0_20], %41 {strides = array<i32>} : memref<8x32xf32, #tpu.memory_space<vmem>>, vector<8x32xf32>,
    %c0_21 = arith.constant 0 : index
    %c0_22 = arith.constant 0 : index
    %43 = vector.load %arg8[%c0_21, %c0_22] : memref<8x8xf32, #tpu.memory_space<vmem>>, vector<8x8xf32>
    tpu.vector_store %arg8[%c0_21, %c0_22], %20 {strides = array<i32>} : memref<8x8xf32, #tpu.memory_space<vmem>>, vector<8x8xf32>,
    %c0_i32_23 = arith.constant 0 : i32
    %44 = arith.cmpi eq, %arg1, %c0_i32_23 : i32
    %45 = arith.extui %44 : i1 to i32
    %c0_i32_24 = arith.constant 0 : i32
    %46 = arith.cmpi ne, %45, %c0_i32_24 : i32
    scf.if %46 {
      %c0_25 = arith.constant 0 : index
      %c0_26 = arith.constant 0 : index
      %47 = vector.load %arg10[%c0_25, %c0_26] : memref<8x1xf32, #tpu.memory_space<vmem>>, vector<8x1xf32>
      %48 = tpu.reciprocal %47 : vector<8x1xf32> -> vector<8x1xf32>
      %c0_27 = arith.constant 0 : index
      %c0_28 = arith.constant 0 : index
      %49 = vector.load %arg11[%c0_27, %c0_28] : memref<8x32xf32, #tpu.memory_space<vmem>>, vector<8x32xf32>
      %50 = vector.broadcast %48 : vector<8x1xf32> to vector<8x32xf32>
      %51 = arith.mulf %49, %50 : vector<8x32xf32>
      %c0_29 = arith.constant 0 : index
      %c0_30 = arith.constant 0 : index
      %52 = vector.load %arg7[%c0_29, %c0_30] : memref<8x32xf32, #tpu.memory_space<vmem>>, vector<8x32xf32>
      tpu.vector_store %arg7[%c0_29, %c0_30], %51 {strides = array<i32>} : memref<8x32xf32, #tpu.memory_space<vmem>>, vector<8x32xf32>,
      %c0_31 = arith.constant 0 : index
      %c0_32 = arith.constant 0 : index
      %53 = vector.load %arg8[%c0_31, %c0_32] : memref<8x8xf32, #tpu.memory_space<vmem>>, vector<8x8xf32>
      %54 = vector.broadcast %25 : f32 to vector<8x8xf32>
      %55 = arith.subf %53, %54 : vector<8x8xf32>
      %56 = math.exp %55 : vector<8x8xf32>
      %57 = vector.broadcast %48 : vector<8x1xf32> to vector<8x8xf32>
      %58 = arith.mulf %56, %57 : vector<8x8xf32>
      %c0_33 = arith.constant 0 : index
      %c0_34 = arith.constant 0 : index
      %59 = vector.load %arg8[%c0_33, %c0_34] : memref<8x8xf32, #tpu.memory_space<vmem>>, vector<8x8xf32>
      tpu.vector_store %arg8[%c0_33, %c0_34], %58 {strides = array<i32>} : memref<8x8xf32, #tpu.memory_space<vmem>>, vector<8x8xf32>,
    } else {
    }
    return
  }
  func.func @transform_0(%arg0: i32, %arg1: i32) -> (i32, i32, i32) {
    %c0_i32 = arith.constant 0 : i32
    %c0_i32_0 = arith.constant 0 : i32
    return %arg0, %arg1, %c0_i32 : i32, i32, i32
  }
  func.func @transform_1(%arg0: i32, %arg1: i32) -> (i32, i32) {
    %c0_i32 = arith.constant 0 : i32
    %c0_i32_0 = arith.constant 0 : i32
    return %arg0, %c0_i32 : i32, i32
  }
  func.func @transform_2(%arg0: i32, %arg1: i32) -> (i32, i32) {
    %c0_i32 = arith.constant 0 : i32
    %c0_i32_0 = arith.constant 0 : i32
    %c0_i32_1 = arith.constant 0 : i32
    return %c0_i32, %c0_i32_0 : i32, i32
  }
  func.func @transform_3(%arg0: i32, %arg1: i32) -> (i32, i32) {
    %c0_i32 = arith.constant 0 : i32
    %c0_i32_0 = arith.constant 0 : i32
    %c0_i32_1 = arith.constant 0 : i32
    return %c0_i32, %c0_i32_0 : i32, i32
  }
  func.func @transform_4(%arg0: i32, %arg1: i32) -> (i32, i32) {
    %c0_i32 = arith.constant 0 : i32
    %c0_i32_0 = arith.constant 0 : i32
    %c0_i32_1 = arith.constant 0 : i32
    return %c0_i32, %c0_i32_0 : i32, i32
  }
  func.func @transform_5(%arg0: i32, %arg1: i32) -> (i32, i32) {
    %c0_i32 = arith.constant 0 : i32
    %c0_i32_0 = arith.constant 0 : i32
    return %arg0, %c0_i32 : i32, i32
  }
  func.func @transform_6(%arg0: i32, %arg1: i32) -> (i32, i32) {
    %c0_i32 = arith.constant 0 : i32
    %c0_i32_0 = arith.constant 0 : i32
    return %arg0, %c0_i32 : i32, i32
  }
}

</mosaic_0001>

<bundles_post_ra>
// kernel: tpu_custom_call.1
= control target key start
LH: loop header
LB: loop body
LE: loop exit
PB: predicated region body
PF: predicated region fallthrough
CT: control target
= control target key end

     0   :  { %12 = vsyncpa [#allocation6], 0  ;;  %s971_s0 = inlined_call_operand.hbm [shape: bf16[8,8,32], index: 0, kind: input, shape index: {}]   ;;  %s972_s1 = inlined_call_operand.vmem [shape: bf16[8,16], index: 1, kind: input, shape index: {}]   ;;  %s973_s2 = inlined_call_operand.vmem [shape: bf16[32,24], index: 2, kind: input, shape index: {}]   ;;  %s974_s3 = inlined_call_operand.vmem [shape: bf16[16,24], index: 3, kind: input, shape index: {}]   ;;  %s975_s4 = inlined_call_operand.vmem [shape: f32[1,24], index: 4, kind: input, shape index: {}]   ;;  %s976_s5 = inlined_call_operand.hbm [shape: f32[8,32], index: 5, kind: output, shape index: {0}]   ;;  %s977_s6 = inlined_call_operand.hbm [shape: f32[8,8], index: 6, kind: output, shape index: {1}]  }
   0x1   :  { %13 = vsyncpa [#allocation7], 0 }
   0x2   :  { %14 = vsyncpa [#allocation10], 0  ;;  %s19_s23 = sshll.u32 %s971_s0, 4  ;;  %s754_s24 = smov [#allocation5]   ;;  %s20_s23 = int_to_ptr.hbm [resolvable:$true] %s19_s23 }
   0x3   :  { %s21_s25 = sshll.u32 %s754_s24, 4  ;;  %s755_s26 = smov 64   ;;  %s22_s25 = int_to_ptr.vmem [resolvable:$true] %s21_s25 }
   0x4   :  { %s756_s27 = smov 4  }
   0x5   :  { %27 = dma.hbm_to_vmem [thread:$0]  %s20_s23, 512, %s22_s25, [#allocation6], %s755_s26, %s755_s26, %s756_s27  }
   0x6   :  { %748 = dma.done.wait [#allocation6], 512  }
   0x7   :  { %749 = vsyncadd [#allocation6], 4294966784  ;;  %v616_v0 = vld [vmem:[%s974_s3] sm:$0xff]  ;;  %v622_v1 = vld [vmem:[%s973_s2 + $0x8] sm:$0xff]  ;;  %vm58_vm0 = vcmask 130048   ;;  %vm293_vm1 = vcmask 188416  }
   0x8   :  { %69 = vmatpush.bf16.msra.mxu0 %v616_v0  ;;  %623 = vmatpush.bf16.msra.mxu1 %v622_v1  ;;  %v49_v2 = vld [vmem:[%s972_s1] sm:$0xf]  ;;  %vm47_vm2 = vcmask 261120   ;;  %v619_v8 = vld [vmem:[#allocation5 + $0x10] sm:$0xff]  ;;  %v620_v9 = vld [vmem:[#allocation5 + $0x18] sm:$0xff]  ;;  %vm75_vm3 = vcmask 195584  }
   0x9   :  { %v621_v3 = vld [vmem:[%s973_s2] sm:$0xff]  ;;  %624 = vmatpush.bf16.msra.mxu2 %v622_v1  ;;  %625 = vmatpush.bf16.msra.mxu3 %v622_v1  ;;  %v617_v10 = vld [vmem:[#allocation5] sm:$0xff]  ;;  %vm348_vm4 = vcmask 1041409   ;;  %vm350_vm5 = vcmask 1042434   ;;  %vm352_vm6 = vcmask 1043459   ;;  %vm354_vm7 = vcmask 1044484  }
   0xa   :  { %v228_v4 = vld [vmem:[%s975_s4] sm:$0x1]  ;;  %vm356_vm8 = vcmask 1045509   ;;  %vm358_vm9 = vcmask 1046534   ;;  %vm360_vm10 = vcmask 1047559   ;;  %vm363_vm11 = vcmask 64512  }
   0xb   :  { %v292_v5 = vand.u32 2147483647, %v228_v4  ;;  %587 = vmatmul.msk.bf16.vlgmr.msra.gmra.mxu0 %vm58_vm0, %v49_v2  ;;  %v618_v6 = vld [vmem:[#allocation5 + $0x8] sm:$0xff]  ;;  %v229_v25 = vpack.c.bf16 %v228_v4, %v228_v4  ;;  %vm45_vm12 = vcmask 7168   ;;  %s759_s2 = smov [#allocation8]   ;;  %s557_s14 = sshll.u32 %s976_s5, 4  ;;  %s558_s14 = int_to_ptr.hbm [resolvable:$true] %s557_s14 }
   0xc   :  { %140 = vmatpush.bf16.msrb.mxu0 %v622_v1  ;;  %626 = vmatpush.bf16.msra.mxu1 %v621_v3  ;;  %s555_s3 = sshll.u32 %s759_s2, 4  ;;  %s760_s15 = smov [#allocation9]   ;;  %s556_s3 = int_to_ptr.vmem [resolvable:$true] %s555_s3 }
   0xd   :  { %v294_v7 = vsel %vm293_vm1, %v292_v5, 0.0  ;;  %627 = vmatpush.bf16.msra.mxu2 %v621_v3  ;;  %628 = vmatpush.bf16.msra.mxu3 %v621_v3  ;;  %v231_v38 = vpack.i.b16 %v229_v25, %v229_v25  ;;  %s566_s16 = sshll.u32 %s760_s15, 4  ;;  %s568_s19 = sshll.u32 %s977_s6, 4  ;;  %s567_s16 = int_to_ptr.vmem [resolvable:$true] %s566_s16  ;;  %s569_s19 = int_to_ptr.hbm [resolvable:$true] %s568_s19 }
   0xe   :  { %295 = vadd.xlane.f32.xlu0 %v294_v7 }
   0xf   :  { %613 = vmatmul.msk.bf16.vlgmr.msra.gmra.mxu1 %vm47_vm2, %v618_v6  ;;  %v233_v52 = vperm.slane %v231_v38, 0 }
  0x10   :  { %141 = vmatpush.bf16.msrb.mxu0 %v621_v3  ;;  %614 = vmatmul.msk.bf16.vlgmr.msra.gmra.mxu2 %vm47_vm2, %v619_v8 }
  0x11   :  { %615 = vmatmul.msk.bf16.vlgmr.msra.gmra.mxu3 %vm47_vm2, %v620_v9  ;;  %v242_v1 = vunpack.c.l.bf16 %v233_v52 }
  0x1b   :  { %612 = vmatmul.msk.bf16.vlgmr.msrb.gmra.mxu0 %vm47_vm2, %v617_v10 }
  0x81   :  { %v296_v63 = vpop.xlane.xlu0 %295 }
  0x82   :  { %v297_v3 = vrot.slane %v296_v63, 4 }
  0x84   :  { %v298_v8 = vadd.f32 %v297_v3, %v296_v63 }
  0x88   :  { %v71_v11 = vpop.f32.mrf.mxu0 }
  0x89   :  { %76 = vst.msk [vmem:[#allocation2] sm:$0xff] %vm75_vm3, %v71_v11 }
  0x8c   :  { %v148_v12 = vpop.f32.mrf.mxu1 }
  0x90   :  { %v163_v13 = vld [vmem:[#allocation2] sm:$0xff]  ;;  %v73_v14 = vpop.f32.mrf.mxu0 }
  0x91   :  { %v166_v15 = vrot.slane %v163_v13, 2  ;;  %v168_v16 = vrot.slane %v163_v13, 4  ;;  %v170_v17 = vrot.slane %v163_v13, 6  ;;  %v167_v18 = vrot.slane %v163_v13, 3 }
  0x92   :  { %v169_v31 = vrot.slane %v163_v13, 5  ;;  %v171_v32 = vrot.slane %v163_v13, 7  ;;  %v172_v37 = vperm.slane %v163_v13, 0  ;;  %v165_v48 = vrot.slane %v163_v13, 1 }
  0x93   :  { %v174_v19 = vperm.slane %v166_v15, 0  ;;  %v153_v20 = vpop.f32.mrf.mxu2  ;;  %v176_v21 = vperm.slane %v168_v16, 0  ;;  %v178_v23 = vperm.slane %v170_v17, 0  ;;  %v175_v24 = vperm.slane %v167_v18, 0 }
  0x94   :  { %v158_v22 = vpop.f32.mrf.mxu3  ;;  %v150_v26 = vpop.f32.mrf.mxu1  ;;  %v177_v44 = vperm.slane %v169_v31, 0  ;;  %v179_v45 = vperm.slane %v171_v32, 0  ;;  %v173_v57 = vperm.slane %v165_v48, 0  ;;  %v299_v14 = vrot.slane %v298_v8, 2 }
  0x95   :  { %v190_v27 = vadd.f32 %v174_v19, %v148_v12  ;;  %v192_v28 = vadd.f32 %v176_v21, %v153_v20  ;;  %v194_v29 = vadd.f32 %v178_v23, %v158_v22  ;;  %v191_v30 = vadd.f32 %v175_v24, %v150_v26 }
  0x96   :  { %v300_v20 = vadd.f32 %v299_v14, %v298_v8 }
  0x97   :  { %v198_v33 = vpack.c.bf16 %v190_v27, %v190_v27  ;;  %v200_v34 = vpack.c.bf16 %v192_v28, %v192_v28  ;;  %v199_v35 = vpack.c.bf16 %v191_v30, %v191_v30  ;;  %v202_v41 = vpack.c.bf16 %v194_v29, %v194_v29 }
  0x98   :  { %v143_v36 = vpop.f32.mrf.mxu0  ;;  %v301_v27 = vrot.slane %v300_v20, 1 }
  0x99   :  { %v206_v39 = vunpack.c.l.bf16 %v198_v33  ;;  %v208_v40 = vunpack.c.l.bf16 %v200_v34  ;;  %v207_v42 = vunpack.c.l.bf16 %v199_v35  ;;  %v188_v43 = vadd.f32 %v172_v37, %v143_v36 }
  0x9a   :  { %v210_v53 = vunpack.c.l.bf16 %v202_v41  ;;  %v302_v34 = vadd.f32 %v301_v27, %v300_v20 }
  0x9b   :  { %640 = vtanh.f32 %v206_v39  ;;  %v155_v46 = vpop.f32.mrf.mxu2  ;;  %v196_v49 = vpack.c.bf16 %v188_v43, %v188_v43 }
  0x9c   :  { %v160_v47 = vpop.f32.mrf.mxu3  ;;  %642 = vtanh.f32 %v208_v40  ;;  %v193_v50 = vadd.f32 %v177_v44, %v155_v46  ;;  %629 = vpush %v302_v34 }
  0x9d   :  { %v195_v51 = vadd.f32 %v179_v45, %v160_v47  ;;  %644 = vtanh.f32 %v207_v42  ;;  %v204_v54 = vunpack.c.l.bf16 %v196_v49 }
  0x9e   :  { %v201_v55 = vpack.c.bf16 %v193_v50, %v193_v50 }
  0x9f   :  { %v203_v56 = vpack.c.bf16 %v195_v51, %v195_v51  ;;  %646 = vtanh.f32 %v204_v54 }
  0xa0   :  { %v209_v58 = vunpack.c.l.bf16 %v201_v55  ;;  %v145_v60 = vpop.f32.mrf.mxu0  ;;  %648 = vtanh.f32 %v210_v53 }
  0xa1   :  { %v211_v59 = vunpack.c.l.bf16 %v203_v56  ;;  %v641_v61 = vpop.eup %640  ;;  %v189_v62 = vadd.f32 %v173_v57, %v145_v60 }
  0xa2   :  { %v643_v0 = vpop.eup %642  ;;  %v222_v2 = vpack.c.bf16 %v641_v61, %v641_v61  ;;  %650 = vtanh.f32 %v209_v58 }
  0xa3   :  { %v224_v4 = vpack.c.bf16 %v643_v0, %v643_v0  ;;  %652 = vtanh.f32 %v211_v59  ;;  %v197_v5 = vpack.c.bf16 %v189_v62, %v189_v62  ;;  %v645_v6 = vpop.eup %644 }
  0xa4   :  { %v236_v7 = vunpack.c.l.bf16 %v222_v2  ;;  %v223_v9 = vpack.c.bf16 %v645_v6, %v645_v6 }
  0xa5   :  { %v205_v10 = vunpack.c.l.bf16 %v197_v5  ;;  %v647_v11 = vpop.eup %646  ;;  %v238_v12 = vunpack.c.l.bf16 %v224_v4 }
  0xa6   :  { %v245_v13 = vmul.f32 %v242_v1, %v236_v7  ;;  %v649_v15 = vpop.eup %648  ;;  %v237_v16 = vunpack.c.l.bf16 %v223_v9  ;;  %v220_v17 = vpack.c.bf16 %v647_v11, %v647_v11  ;;  %v338_v9 = vlaneseq  ;;  %v79_v11 = vld [vmem:[#allocation5 + $0x8] sm:$0xf] }
  0xa7   :  { %654 = vtanh.f32 %v205_v10  ;;  %v247_v26 = vmul.f32 %v242_v1, %v238_v12  ;;  %v226_v32 = vpack.c.bf16 %v649_v15, %v649_v15  ;;  %v838_v10 = vld [vmem:[#allocation5 + $0xc] sm:$0xff]  }
  0xa8   :  { %v651_v18 = vpop.eup %650  ;;  %v253_v19 = vpack.c.bf16 %v245_v13, %v245_v13  ;;  %v234_v22 = vunpack.c.l.bf16 %v220_v17  ;;  %v246_v24 = vmul.f32 %v242_v1, %v237_v16  ;;  %v840_v13 = vld [vmem:[#allocation5] sm:$0xff]   ;;  %v844_v15 = vand.u32 127, %v338_v9 }
  0xa9   :  { %v653_v21 = vpop.eup %652  ;;  %v225_v23 = vpack.c.bf16 %v651_v18, %v651_v18  ;;  %v255_v43 = vpack.c.bf16 %v247_v26, %v247_v26  ;;  %v240_v44 = vunpack.c.l.bf16 %v226_v32  ;;  %v389_v16 = vunpack.c.l.bf16 %v838_v10 }
  0xaa   :  { %v261_v25 = vunpack.c.l.bf16 %v253_v19  ;;  %v227_v29 = vpack.c.bf16 %v653_v21, %v653_v21  ;;  %v254_v30 = vpack.c.bf16 %v246_v24, %v246_v24  ;;  %v243_v31 = vmul.f32 %v242_v1, %v234_v22  ;;  %v853_v21 = vld [vmem:[#allocation5 + $0x14] sm:$0xff]  }
  0xab   :  { %v239_v28 = vunpack.c.l.bf16 %v225_v23  ;;  %v263_v49 = vunpack.c.l.bf16 %v255_v43  ;;  %v249_v52 = vmul.f32 %v242_v1, %v240_v44  ;;  %v388_v17 = vunpack.c.l.bf16 %v79_v11 }
  0xac   :  { %v274_v33 = vsel %vm75_vm3, %v261_v25, 0.0  ;;  %v262_v36 = vunpack.c.l.bf16 %v254_v30  ;;  %v251_v37 = vpack.c.bf16 %v243_v31, %v243_v31  ;;  %v241_v40 = vunpack.c.l.bf16 %v227_v29 }
  0xad   :  { %v655_v35 = vpop.eup %654  ;;  %275 = vadd.xlane.f32.xlu1 %v274_v33  ;;  %v248_v38 = vmul.f32 %v242_v1, %v239_v28  ;;  %v280_v55 = vsel %vm75_vm3, %v263_v49, 0.0  ;;  %v257_v58 = vpack.c.bf16 %v249_v52, %v249_v52  ;;  %v386_v23 = vunpack.c.l.bf16 %v840_v13 }
  0xae   :  { %v221_v39 = vpack.c.bf16 %v655_v35, %v655_v35  ;;  %v277_v41 = vsel %vm75_vm3, %v262_v36, 0.0  ;;  %v259_v42 = vunpack.c.l.bf16 %v251_v37  ;;  %v250_v50 = vmul.f32 %v242_v1, %v241_v40  ;;  %v870_v40 = vld [vmem:[#allocation5 + $0x1c] sm:$0xf] }
  0xaf   :  { %278 = vadd.xlane.f32.xlu2 %v277_v41  ;;  %v256_v47 = vpack.c.bf16 %v248_v38, %v248_v38  ;;  %v265_v61 = vunpack.c.l.bf16 %v257_v58  ;;  %v390_v29 = vunpack.c.h.bf16 %v838_v10  ;;  %v391_v34 = vunpack.c.l.bf16 %v853_v21 }
  0xb0   :  { %v235_v45 = vunpack.c.l.bf16 %v221_v39  ;;  %v268_v46 = vsel %vm75_vm3, %v259_v42, 0.0  ;;  %v258_v56 = vpack.c.bf16 %v250_v50, %v250_v50  ;;  %v387_v39 = vunpack.c.h.bf16 %v840_v13 }
  0xb1   :  { %269 = vadd.xlane.f32.xlu0 %v268_v46  ;;  %v264_v53 = vunpack.c.l.bf16 %v256_v47  ;;  %v286_v63 = vsel %vm75_vm3, %v265_v61, 0.0  ;;  %v393_v49 = vunpack.c.l.bf16 %v870_v40 }
  0xb2   :  { %v244_v48 = vmul.f32 %v242_v1, %v235_v45  ;;  %v266_v60 = vunpack.c.l.bf16 %v258_v56 }
  0xb3   :  { %v283_v59 = vsel %vm75_vm3, %v264_v53, 0.0 }
  0xb4   :  { %v252_v51 = vpack.c.bf16 %v244_v48, %v244_v48  ;;  %v289_v62 = vsel %vm75_vm3, %v266_v60, 0.0 }
  0xb6   :  { %v260_v54 = vunpack.c.l.bf16 %v252_v51  ;;  %v757_v51 = vmov 0.0  }
  0xb7   :  { %281 = vadd.xlane.f32.xlu2 %v280_v55  ;;  %48 = vst.msk [vmem:[#allocation4] sm:$0xff] %vm47_vm2, %v757_v51  ;;  %v392_v55 = vunpack.c.h.bf16 %v853_v21 }
  0xb8   :  { %v271_v57 = vsel %vm75_vm3, %v260_v54, 0.0  ;;  %46 = vst.msk [vmem:[#allocation3] sm:$0xff] %vm45_vm12, %v757_v51 }
  0xb9   :  { %272 = vadd.xlane.f32.xlu1 %v271_v57  ;;  %284 = vadd.xlane.f32.xlu0 %v283_v59 }
  0xbf   :  { %290 = vadd.xlane.f32.xlu2 %v289_v62 }
  0xc1   :  { %287 = vadd.xlane.f32.xlu1 %v286_v63 }
  0xcd   :  { %s630_s1 = spop %629 }
  0xce   :  { %v827_v0 = vstv %s630_s1 }
 0x120   :  { %v829_v1 = vpop.xlane.xlu1 %275 }
 0x121   :  { %v307_v2 = vsub.f32 %v829_v1, %v827_v0  ;;  %v503_v45 = vperm.slane %v829_v1, %v844_v15 }
 0x122   :  { %v833_v3 = vpop.xlane.xlu2 %278 }
 0x123   :  { %v317_v4 = vmul.f32 1.442695, %v307_v2  ;;  %v308_v5 = vsub.f32 %v833_v3, %v827_v0  ;;  %v504_v47 = vperm.slane %v833_v3, %v844_v15 }
 0x124   :  { %v270_v6 = vpop.xlane.xlu0 %269 }
 0x125   :  { %656 = vpow2.f32 %v317_v4  ;;  %v319_v7 = vmul.f32 1.442695, %v308_v5  ;;  %v305_v8 = vsub.f32 %v270_v6, %v827_v0  ;;  %v501_v33 = vperm.slane %v270_v6, %v844_v15 }
 0x127   :  { %658 = vpow2.f32 %v319_v7  ;;  %v313_v12 = vmul.f32 1.442695, %v305_v8 }
 0x129   :  { %660 = vpow2.f32 %v313_v12 }
 0x12a   :  { %v847_v18 = vpop.xlane.xlu2 %281 }
 0x12b   :  { %v842_v14 = vpop.eup %656  ;;  %v309_v20 = vsub.f32 %v847_v18, %v827_v0  ;;  %v505_v60 = vperm.slane %v847_v18, %v844_v15 }
 0x12c   :  { %v372_v19 = vpack.c.bf16 %v842_v14, %v842_v14  ;;  %v273_v22 = vpop.xlane.xlu1 %272  ;;  %v856_v24 = vpop.xlane.xlu0 %284  ;;  %v342_v58 = vperm.slane %v842_v14, %v844_v15 }
 0x12d   :  { %v306_v25 = vsub.f32 %v273_v22, %v827_v0  ;;  %v502_v26 = vperm.slane %v273_v22, %v844_v15  ;;  %v860_v27 = vpop.eup %658  ;;  %v321_v30 = vmul.f32 1.442695, %v309_v20  ;;  %v310_v31 = vsub.f32 %v856_v24, %v827_v0 }
 0x12e   :  { %v380_v28 = vunpack.c.l.bf16 %v372_v19  ;;  %v373_v32 = vpack.c.bf16 %v860_v27, %v860_v27  ;;  %v343_v62 = vperm.slane %v860_v27, %v844_v15  ;;  %v506_v1 = vperm.slane %v856_v24, %v844_v15 }
 0x12f   :  { %v315_v35 = vmul.f32 1.442695, %v306_v25  ;;  %v661_v36 = vpop.eup %660  ;;  %662 = vpow2.f32 %v321_v30  ;;  %v323_v38 = vmul.f32 1.442695, %v310_v31  ;;  %v509_v43 = vsel %vm348_vm4, %v502_v26, %v501_v33 }
 0x130   :  { %v396_v37 = vmul.f32 %v388_v17, %v380_v28  ;;  %v381_v41 = vunpack.c.l.bf16 %v373_v32  ;;  %v370_v42 = vpack.c.bf16 %v661_v36, %v661_v36  ;;  %v510_v53 = vsel %vm350_vm5, %v503_v45, %v509_v43 }
 0x131   :  { %664 = vpow2.f32 %v315_v35  ;;  %v511_v6 = vsel %vm352_vm6, %v504_v47, %v510_v53 }
 0x132   :  { %v404_v44 = vpack.c.bf16 %v396_v37, %v396_v37  ;;  %666 = vpow2.f32 %v323_v38  ;;  %v397_v46 = vmul.f32 %v389_v16, %v381_v41  ;;  %v378_v48 = vunpack.c.l.bf16 %v370_v42  ;;  %v878_v50 = vpop.xlane.xlu2 %290 }
 0x133   :  { %v312_v54 = vsub.f32 %v878_v50, %v827_v0  ;;  %v340_v16 = vperm.slane %v661_v36, %v844_v15  ;;  %v512_v22 = vsel %vm354_vm7, %v505_v60, %v511_v6  ;;  %v508_v31 = vperm.slane %v878_v50, %v844_v15 }
 0x134   :  { %v413_v52 = vunpack.c.l.bf16 %v404_v44  ;;  %v886_v56 = vpop.xlane.xlu1 %287  ;;  %v405_v57 = vpack.c.bf16 %v397_v46, %v397_v46  ;;  %v394_v59 = vmul.f32 %v386_v23, %v378_v48  ;;  %v513_v44 = vsel %vm356_vm8, %v506_v1, %v512_v22 }
 0x135   :  { %v892_v61 = vpop.eup %662  ;;  %v327_v2 = vmul.f32 1.442695, %v312_v54  ;;  %v311_v7 = vsub.f32 %v886_v56, %v827_v0 }
 0x136   :  { %v433_v63 = vsel %vm47_vm2, %v413_v52, 0.0  ;;  %v414_v4 = vunpack.c.l.bf16 %v405_v57  ;;  %v402_v5 = vpack.c.bf16 %v394_v59, %v394_v59  ;;  %v374_v9 = vpack.c.bf16 %v892_v61, %v892_v61 }
 0x137   :  { %v665_v3 = vpop.eup %664  ;;  %668 = vpow2.f32 %v327_v2  ;;  %v434_v14 = vrot.slane %v433_v63, 4  ;;  %v325_v26 = vmul.f32 1.442695, %v311_v7 }
 0x138   :  { %v902_v8 = vpop.eup %666  ;;  %v341_v11 = vperm.slane %v665_v3, %v844_v15  ;;  %v371_v12 = vpack.c.bf16 %v665_v3, %v665_v3  ;;  %v440_v13 = vsel %vm47_vm2, %v414_v4, 0.0  ;;  %v411_v17 = vunpack.c.l.bf16 %v402_v5 }
 0x139   :  { %v441_v18 = vrot.slane %v440_v13, 4  ;;  %v382_v19 = vunpack.c.l.bf16 %v374_v9  ;;  %v375_v20 = vpack.c.bf16 %v902_v8, %v902_v8  ;;  %v435_v33 = vadd.f32 %v434_v14, %v433_v63 }
 0x13a   :  { %v419_v23 = vsel %vm47_vm2, %v411_v17, 0.0  ;;  %v349_v24 = vsel %vm348_vm4, %v341_v11, %v340_v16  ;;  %v379_v25 = vunpack.c.l.bf16 %v371_v12  ;;  %670 = vpow2.f32 %v325_v26 }
 0x13b   :  { %v420_v27 = vrot.slane %v419_v23, 4  ;;  %v398_v28 = vmul.f32 %v390_v29, %v382_v19  ;;  %v383_v30 = vunpack.c.l.bf16 %v375_v20  ;;  %v442_v32 = vadd.f32 %v441_v18, %v440_v13 }
 0x13c   :  { %v395_v35 = vmul.f32 %v387_v39, %v379_v25  ;;  %v351_v42 = vsel %vm350_vm5, %v342_v58, %v349_v24  ;;  %v507_v29 = vperm.slane %v886_v56, %v844_v15  ;;  %v344_v39 = vperm.slane %v892_v61, %v844_v15 }
 0x13d   :  { %v669_v36 = vpop.eup %668  ;;  %v421_v37 = vadd.f32 %v420_v27, %v419_v23  ;;  %v406_v38 = vpack.c.bf16 %v398_v28, %v398_v28  ;;  %v399_v41 = vmul.f32 %v391_v34, %v383_v30  ;;  %v345_v34 = vperm.slane %v902_v8, %v844_v15 }
 0x13e   :  { %v403_v43 = vpack.c.bf16 %v395_v35, %v395_v35  ;;  %v377_v10 = vpack.c.bf16 %v669_v36, %v669_v36  ;;  %v353_v53 = vsel %vm352_vm6, %v343_v62, %v351_v42  ;;  %v443_v54 = vrot.slane %v442_v32, 2 }
 0x13f   :  { %v422_v45 = vrot.slane %v421_v37, 2  ;;  %v415_v46 = vunpack.c.l.bf16 %v406_v38  ;;  %v407_v47 = vpack.c.bf16 %v399_v41, %v399_v41  ;;  %v436_v57 = vrot.slane %v435_v33, 2 }
 0x140   :  { %v412_v48 = vunpack.c.l.bf16 %v403_v43  ;;  %v385_v52 = vunpack.c.l.bf16 %v377_v10  ;;  %v671_v59 = vpop.eup %670  ;;  %v355_v1 = vsel %vm354_vm7, %v344_v39, %v353_v53  ;;  %v347_v12 = vperm.slane %v669_v36, %v844_v15 }
 0x141   :  { %v447_v56 = vsel %vm47_vm2, %v415_v46, 0.0  ;;  %v416_v58 = vunpack.c.l.bf16 %v407_v47  ;;  %v423_v3 = vadd.f32 %v422_v45, %v421_v37  ;;  %v376_v5 = vpack.c.bf16 %v671_v59, %v671_v59 }
 0x142   :  { %v448_v60 = vrot.slane %v447_v56, 4  ;;  %v426_v63 = vsel %vm47_vm2, %v412_v48, 0.0  ;;  %v401_v61 = vmul.f32 %v393_v49, %v385_v52  ;;  %v346_v8 = vperm.slane %v671_v59, %v844_v15 }
 0x143   :  { %v454_v2 = vsel %vm47_vm2, %v416_v58, 0.0  ;;  %v427_v4 = vrot.slane %v426_v63, 4  ;;  %v384_v11 = vunpack.c.l.bf16 %v376_v5  ;;  %v357_v13 = vsel %vm356_vm8, %v345_v34, %v355_v1  ;;  %v329_v5 = vld [vmem:[#allocation3] sm:$0xff] }
 0x144   :  { %v449_v62 = vadd.f32 %v448_v60, %v447_v56  ;;  %v455_v6 = vrot.slane %v454_v2, 4  ;;  %v409_v7 = vpack.c.bf16 %v401_v61, %v401_v61  ;;  %v444_v40 = vadd.f32 %v443_v54, %v442_v32  ;;  %v410_v61 = vld [vmem:[#allocation4] sm:$0xff] }
 0x145   :  { %v428_v9 = vadd.f32 %v427_v4, %v426_v63  ;;  %v437_v49 = vadd.f32 %v436_v57, %v435_v33  ;;  %v359_v16 = vsel %vm358_vm9, %v346_v8, %v357_v13  ;;  %v400_v19 = vmul.f32 %v392_v55, %v384_v11 }
 0x146   :  { %v418_v14 = vunpack.c.l.bf16 %v409_v7  ;;  %v456_v17 = vadd.f32 %v455_v6, %v454_v2  ;;  %v361_v20 = vsel %vm360_vm10, %v347_v12, %v359_v16  ;;  %v450_v22 = vrot.slane %v449_v62, 2 }
 0x147   :  { %v429_v18 = vrot.slane %v428_v9, 2  ;;  %v424_v23 = vrot.slane %v423_v3, 1  ;;  %v364_v25 = vsel %vm363_vm11, %v361_v20, 0.0  ;;  %v408_v28 = vpack.c.bf16 %v400_v19, %v400_v19 }
 0x148   :  { %v468_v24 = vsel %vm47_vm2, %v418_v14, 0.0  ;;  %v514_v30 = vsel %vm358_vm9, %v507_v29, %v513_v44  ;;  %365 = vadd.xlane.f32.xlu0 %v364_v25  ;;  %v438_v32 = vrot.slane %v437_v49, 1  ;;  %v457_v55 = vrot.slane %v456_v17, 2 }
 0x149   :  { %v430_v26 = vadd.f32 %v429_v18, %v428_v9  ;;  %v469_v27 = vrot.slane %v468_v24, 4  ;;  %v515_v21 = vsel %vm360_vm10, %v508_v31, %v514_v30  ;;  %v417_v35 = vunpack.c.l.bf16 %v408_v28 }
 0x14a   :  { %517 = vst.msk [vmem:[#allocation9] sm:$0xff] %vm363_vm11, %v515_v21  ;;  %v445_v37 = vrot.slane %v444_v40, 1  ;;  %v451_v38 = vadd.f32 %v450_v22, %v449_v62  ;;  %v425_v41 = vadd.f32 %v424_v23, %v423_v3  ;;  %v439_v15 = vadd.f32 %v438_v32, %v437_v49 }
 0x14b   :  { %v431_v33 = vrot.slane %v430_v26, 1  ;;  %v470_v36 = vadd.f32 %v469_v27, %v468_v24  ;;  %v461_v43 = vsel %vm47_vm2, %v417_v35, 0.0  ;;  %v458_v29 = vadd.f32 %v457_v55, %v456_v17 }
 0x14c   :  { %v462_v50 = vrot.slane %v461_v43, 4  ;;  %v452_v39 = vrot.slane %v451_v38, 1  ;;  %v446_v46 = vadd.f32 %v445_v37, %v444_v40  ;;  %v758_v4 = vmov 0  }
 0x14d   :  { %v432_v42 = vadd.f32 %v431_v33, %v430_v26  ;;  %v471_v10 = vrot.slane %v470_v36, 2  ;;  %v459_v48 = vrot.slane %v458_v29, 1  ;;  %638 = vset.pattern.permute.xlu1 %v758_v4  ;;  %639 = vset.pattern.permute.xlu0 %v758_v4 }
 0x14e   :  { %v463_v45 = vadd.f32 %v462_v50, %v461_v43  ;;  %v453_v52 = vadd.f32 %v452_v39, %v451_v38 }
 0x14f   :  { %v483_v31 = vsel %vm348_vm4, %v432_v42, %v425_v41  ;;  %v472_v47 = vadd.f32 %v471_v10, %v470_v36  ;;  %v460_v58 = vadd.f32 %v459_v48, %v458_v29 }
 0x150   :  { %v484_v44 = vsel %vm350_vm5, %v439_v15, %v483_v31  ;;  %v464_v34 = vrot.slane %v463_v45, 2 }
 0x151   :  { %v485_v51 = vsel %vm352_vm6, %v446_v46, %v484_v44  ;;  %v473_v54 = vrot.slane %v472_v47, 1  ;;  %v544_v18 = vld [vmem:[#allocation9] sm:$0xff] }
 0x152   :  { %v465_v53 = vadd.f32 %v464_v34, %v463_v45  ;;  %v486_v56 = vsel %vm354_vm7, %v453_v52, %v485_v51  ;;  %v545_v19 = vsub.f32 %v544_v18, %v827_v0 }
 0x153   :  { %v474_v60 = vadd.f32 %v473_v54, %v472_v47  ;;  %v487_v63 = vsel %vm356_vm8, %v460_v58, %v486_v56 }
 0x154   :  { %v466_v57 = vrot.slane %v465_v53, 1  ;;  %v546_v20 = vmul.f32 1.442695, %v545_v19 }
 0x156   :  { %v467_v59 = vadd.f32 %v466_v57, %v465_v53 }
 0x158   :  { %v488_v1 = vsel %vm358_vm9, %v467_v59, %v487_v63 }
 0x159   :  { %v489_v2 = vsel %vm360_vm10, %v474_v60, %v488_v1 }
 0x15a   :  { %v491_v3 = vadd.f32 %v489_v2, %v410_v61 }
 0x15c   :  { %492 = vst.msk [vmem:[#allocation4] sm:$0xff] %vm47_vm2, %v491_v3 }
 0x163   :  { %v536_v23 = vld [vmem:[#allocation4] sm:$0xff] }
 0x1bb   :  { %v366_v62 = vpop.xlane.xlu0 %365 }
 0x1bc   :  { %v367_v6 = vadd.f32 %v366_v62, %v329_v5 }
 0x1be   :  { %369 = vst.msk [vmem:[#allocation3] sm:$0xff] %vm45_vm12, %v367_v6 }
 0x1c5   :  { %v521_v7 = vld [vmem:[#allocation3] sm:$0xff] }
 0x1c6   :  { %672 = vrcp.f32 %v521_v7  ;;  %v533_v12 = vand.u32 2147483648, %v521_v7  ;;  %v531_v40 = vand.u32 2147483647, %v521_v7  ;;  %vm527_vm14 = vweird.f32 %v521_v7 }
 0x1c7   :  { %674 = vpow2.f32 %v546_v20 }
 0x1c8   :  { %v534_v14 = vor.u32 1.1754944e-38, %v533_v12  ;;  %vm532_vm0 = vcmp.eq.f32.partialorder %v531_v40, 8.507059e+37 }
 0x1cc   :  { %v673_v8 = vpop.eup %672 }
 0x1cd   :  { %v523_v9 = vmul.f32 %v673_v8, %v521_v7  ;;  %vm528_vm13 = vweird.f32 %v673_v8  ;;  %v675_v22 = vpop.eup %674 }
 0x1ce   :  { %vm529_vm15 = vmor %vm527_vm14, %vm528_vm13 }
 0x1cf   :  { %v524_v11 = vsub.f32 1.0, %v523_v9 }
 0x1d1   :  { %v525_v13 = vmul.f32 %v673_v8, %v524_v11 }
 0x1d3   :  { %v526_v49 = vadd.f32 %v673_v8, %v525_v13 }
 0x1d5   :  { %v530_v16 = vsel %vm529_vm15, %v673_v8, %v526_v49 }
 0x1d6   :  { %v535_v17 = vsel %vm532_vm0, %v534_v14, %v530_v16 }
 0x1d7   :  { %539 = vperm.xlu1 %638, %v535_v17  }
 0x249   :  { %v540_v24 = vpop.permute.xlu1 %539 }
 0x24a   :  { %v542_v25 = vmul.f32 %v540_v24, %v536_v23  ;;  %v548_v26 = vmul.f32 %v675_v22, %v540_v24 }
 0x24c   :  { %543 = vst.msk [vmem:[#allocation8] sm:$0xff] %vm47_vm2, %v542_v25 }
 0x24d   :  { %549 = vst.msk [vmem:[#allocation9] sm:$0xff] %vm363_vm11, %v548_v26  ;;  %560 = dma.vmem_to_hbm [thread:$0]  %s556_s3, 128, %s558_s14, [#allocation7]  }
 0x24e   :  { %571 = dma.vmem_to_hbm [thread:$0]  %s567_s16, 128, %s569_s19, [#allocation10]  }
 0x24f   :  { %750 = dma.done.wait [#allocation7], 128  }
 0x250   :  { %751 = vsyncadd [#allocation7], 4294967168 }
 0x251   :  { %752 = dma.done.wait [#allocation10], 128  }
 0x252   :  { %753 = vsyncadd [#allocation10], 4294967168 }
 0x253   :  { %580 = vsyncpa [#allocation6], 1 }
 0x254   :  { %581 = vsyncpa [#allocation7], 1 }
 0x255   :  { %582 = vsyncpa [#allocation10], 1 }

</bundles_post_ra>
